<compile_context>
chip_gen: v6e
topology: v6e:2x2x1
jax: 0.10.0
libtpu: 0.0.40
codegen_flags: <defaults>
</compile_context>

<pallas_src>
import math

import jax
import jax.numpy as jnp
from jax.experimental import pallas as pl
from jax.experimental.pallas import tpu as pltpu


_LANE = 128
_MAX_COLS = 1024                      # lane-dense target: up to 8 * 128 lanes/row
_TARGET_BLOCK_BYTES = 4 * 1024 * 1024  # ~4 MiB blocks: near HBM roofline everywhere
_VMEM_LIMIT_BYTES = 32 * 1024 * 1024   # covers 4 buffers x 4 MiB + headroom (<= v7x physical)


# ---------------------------------------------------------------------------
# Path 1 (default materialize): HBM -> HBM DMA copy, no VMEM round trip.
# ---------------------------------------------------------------------------

def _make_dma_copy_kernel(bounds):
    """Kernel that copies `x_hbm` into `o_hbm` with one DMA per row slab."""
    n_chunks = len(bounds) - 1

    def kernel(x_hbm, o_hbm, sems):
        copies = []
        for c in range(n_chunks):
            lo, hi = bounds[c], bounds[c + 1]
            cp = pltpu.make_async_copy(x_hbm.at[lo:hi], o_hbm.at[lo:hi], sems.at[c])
            cp.start()
            copies.append(cp)
        for cp in copies:
            cp.wait()

    return kernel


def _chunk_bounds(rows, max_chunks=4):
    """Split `rows` into <= max_chunks slabs with sublane-aligned boundaries."""
    if rows < 16:
        return [0, rows]
    n = min(max_chunks, rows // 8)
    bounds = [0]
    for c in range(1, n):
        b = (rows * c // n) // 8 * 8
        if b > bounds[-1]:
            bounds.append(b)
    if rows > bounds[-1]:
        bounds.append(rows)
    return bounds


def _dma_copy(x: jax.Array) -> jax.Array:
    orig_shape = x.shape
    dtype = x.dtype
    total = math.prod(orig_shape) if orig_shape else 1
    if total == 0:
        return x

    if total % _LANE == 0:
        cols = _LANE
        while cols * 2 <= _MAX_COLS and total % (cols * 2) == 0:
            cols *= 2
        rows = total // cols
        x_view = x.reshape(rows, cols)
        bounds = _chunk_bounds(rows)
    else:
        # Lane width is irrelevant for HBM->HBM DMA (no vreg stores); keep the
        # tail-sized array as one contiguous 1-D DMA.
        x_view = x.reshape(total)
        bounds = [0, total]

    n_chunks = len(bounds) - 1
    nbytes = total * jnp.dtype(dtype).itemsize

    out = pl.pallas_call(
        _make_dma_copy_kernel(tuple(bounds)),
        out_shape=jax.ShapeDtypeStruct(x_view.shape, dtype),
        in_specs=[pl.BlockSpec(memory_space=pl.ANY)],
        out_specs=pl.BlockSpec(memory_space=pl.ANY),
        scratch_shapes=[pltpu.SemaphoreType.DMA((n_chunks,))],
        cost_estimate=pl.CostEstimate(
            flops=0, transcendentals=0, bytes_accessed=2 * nbytes
        ),
    )(x_view)
    return out.reshape(orig_shape)


# ---------------------------------------------------------------------------
# Path 2 (optional): tiled, double-buffered VMEM copy.
# ---------------------------------------------------------------------------

def _copy_kernel(x_ref, o_ref):
    o_ref[...] = x_ref[...]


def _sublane_multiple(dtype) -> int:
    # Packed sub-32-bit rows travel in pairs/quads along the sublane axis.
    return {4: 8, 2: 16, 1: 32}.get(jnp.dtype(dtype).itemsize, 8)


def _pick_block_rows(rows: int, cols: int, dtype) -> int:
    sub = _sublane_multiple(dtype)
    row_bytes = cols * jnp.dtype(dtype).itemsize
    max_tr = max(sub, (_TARGET_BLOCK_BYTES // row_bytes) // sub * sub)

    if rows <= max_tr:
        # Small input fits one block; still split into two tiles when possible
        # so a ("parallel",) grid keeps both v7x TensorCores streaming
        # (no effect on single-core v5e/v6e).
        if rows >= 2 * sub:
            if rows % 2 == 0 and (rows // 2) % sub == 0:
                return rows // 2  # exact 2-way split, no masked tail
            half = (rows + 1) // 2
            return ((half + sub - 1) // sub) * sub
        return rows

    # Prefer the largest divisor of rows that is a sublane multiple and fits
    # the byte budget: every tile is full -> no masked vst epilogue.
    d = max_tr
    while d >= sub:
        if rows % d == 0:
            return d
        d -= sub
    return max_tr  # fall back: masked last tile (correct, slightly slower)


def _vmem_tiled_copy(x: jax.Array) -> jax.Array:
    orig_shape = x.shape
    dtype = x.dtype
    total = math.prod(orig_shape) if orig_shape else 1
    if total == 0:
        return x

    # Lane-sparse tails lower to masked vst.msk stores; pad in the wrapper
    # (pure layout plumbing) so the kernel only sees lane-dense tiles.
    padded_total = total
    if total % _LANE != 0:
        padded_total = ((total + _LANE - 1) // _LANE) * _LANE
        x_flat = jnp.pad(x.reshape(total), (0, padded_total - total))
    else:
        x_flat = x.reshape(total)

    cols = _LANE
    while cols * 2 <= _MAX_COLS and padded_total % (cols * 2) == 0:
        cols *= 2
    rows = padded_total // cols
    x2 = x_flat.reshape(rows, cols)

    tr = _pick_block_rows(rows, cols, dtype)
    grid = (pl.cdiv(rows, tr),)
    nbytes = padded_total * jnp.dtype(dtype).itemsize

    out2 = pl.pallas_call(
        _copy_kernel,
        out_shape=jax.ShapeDtypeStruct((rows, cols), dtype),
        grid=grid,
        in_specs=[pl.BlockSpec((tr, cols), lambda i: (i, 0))],
        out_specs=pl.BlockSpec((tr, cols), lambda i: (i, 0)),
        compiler_params=pltpu.CompilerParams(
            # Independent row tiles: lets the two v7x TensorCores each stream
            # half the rows; measured no-op on single-core v5e/v6e.
            dimension_semantics=("parallel",),
            # 4-MiB blocks x 4 buffers (in+out, double-buffered) = 16 MiB,
            # which is exactly the v5e default scoped limit; raise explicitly.
            vmem_limit_bytes=_VMEM_LIMIT_BYTES,
        ),
        cost_estimate=pl.CostEstimate(
            flops=0, transcendentals=0, bytes_accessed=2 * nbytes
        ),
    )(x2)

    out_flat = out2.reshape(padded_total)
    if padded_total != total:
        out_flat = out_flat[:total]
    return out_flat.reshape(orig_shape)


# ---------------------------------------------------------------------------
# Public forward
# ---------------------------------------------------------------------------

def projection_identity_forward(
    x: jax.Array, *, materialize: bool = False, method: str = "dma"
) -> jax.Array:
    """Identity projection.

    Default: returns `x` unchanged (the optimal, zero-traffic identity).
    `materialize=True`: returns a fresh buffer.  method="dma" (default) copies
    HBM->HBM via async DMA; method="vmem" uses the tiled VMEM copy kernel.
    """
    if not materialize:
        return x
    if method == "dma":
        return _dma_copy(x)
    if method == "vmem":
        return _vmem_tiled_copy(x)
    raise ValueError(f"unknown method: {method!r}")


if __name__ == "__main__":
    key = jax.random.PRNGKey(0)
    # Small NCHW input consistent with a projection applied to conv features.
    x = jax.random.normal(key, (2, 4, 16, 16), dtype=jnp.float32)

    # Fast path: true identity (no copy) — this is the module's semantics.
    y_fast = jax.block_until_ready(projection_identity_forward(x))
    assert y_fast.shape == x.shape and y_fast.dtype == x.dtype
    assert bool(jnp.all(y_fast == x)), "identity fast-path mismatch"

    # HBM->HBM DMA copy path.
    y_dma = jax.block_until_ready(projection_identity_forward(x, materialize=True))
    assert y_dma.shape == x.shape and y_dma.dtype == x.dtype
    assert bool(jnp.all(y_dma == x)), "DMA copy mismatch"

    # Tiled VMEM copy path.
    y_vmem = jax.block_until_ready(
        projection_identity_forward(x, materialize=True, method="vmem")
    )
    assert bool(jnp.all(y_vmem == x)), "VMEM copy mismatch"

    # Larger f32 input: exercises multi-chunk DMA and the 2-way tile split.
    xb = jax.random.normal(jax.random.PRNGKey(0), (256, 512), dtype=jnp.float32)
    yb_dma = jax.block_until_ready(projection_identity_forward(xb, materialize=True))
    yb_vmem = jax.block_until_ready(
        projection_identity_forward(xb, materialize=True, method="vmem")
    )
    assert bool(jnp.all(yb_dma == xb)) and bool(jnp.all(yb_vmem == xb))

    # Lane-sparse input (element count not a multiple of 128): pad/slice path.
    xs = jax.random.normal(jax.random.PRNGKey(0), (3, 5, 7), dtype=jnp.float32)
    ys_dma = jax.block_until_ready(projection_identity_forward(xs, materialize=True))
    ys_vmem = jax.block_until_ready(
        projection_identity_forward(xs, materialize=True, method="vmem")
    )
    assert bool(jnp.all(ys_dma == xs)) and bool(jnp.all(ys_vmem == xs))

    # bf16 input: exercises dtype-aware sublane sizing.
    xh = jax.random.normal(jax.random.PRNGKey(0), (32, 256), dtype=jnp.float32)
    xh = xh.astype(jnp.bfloat16)
    yh_dma = jax.block_until_ready(projection_identity_forward(xh, materialize=True))
    yh_vmem = jax.block_until_ready(
        projection_identity_forward(xh, materialize=True, method="vmem")
    )
    assert yh_dma.dtype == jnp.bfloat16 and yh_vmem.dtype == jnp.bfloat16
    assert bool(jnp.all(yh_dma == xh)) and bool(jnp.all(yh_vmem == xh))

    print("KERNEL_OK")
</pallas_src>

<mosaic_0001>
module attributes {stable_mosaic.version = 11 : i64} {
  func.func @kernel(%arg0: memref<2x1024xf32, #tpu.memory_space<any>>, %arg1: memref<2x1024xf32, #tpu.memory_space<any>>, %arg2: memref<1x!tpu.dma_semaphore, #tpu.memory_space<semaphore_mem>>) attributes {dimension_semantics = [], scalar_prefetch = 0 : i64, scratch_operands = 1 : i64, tpu.core_type = #tpu.core_type<tc>} {
    %c0_i32 = arith.constant 0 : i32
    %c0_i32_0 = arith.constant 0 : i32
    %c0_i32_1 = arith.constant 0 : i32
    %0 = tpu.memref_slice %arg0[%c0_i32_0, %c0_i32_1] : memref<2x1024xf32, #tpu.memory_space<any>> -> memref<2x1024xf32, #tpu.memory_space<any>>
    %c0_i32_2 = arith.constant 0 : i32
    %c0_i32_3 = arith.constant 0 : i32
    %1 = tpu.memref_slice %arg1[%c0_i32_2, %c0_i32_3] : memref<2x1024xf32, #tpu.memory_space<any>> -> memref<2x1024xf32, #tpu.memory_space<any>>
    %2 = tpu.memref_slice %arg2[%c0_i32] : memref<1x!tpu.dma_semaphore, #tpu.memory_space<semaphore_mem>> -> memref<1x!tpu.dma_semaphore, #tpu.memory_space<semaphore_mem>>
    %3 = tpu.memref_squeeze %2 : memref<1x!tpu.dma_semaphore, #tpu.memory_space<semaphore_mem>> -> memref<!tpu.dma_semaphore, #tpu.memory_space<semaphore_mem>>
    tpu.enqueue_dma source(%0 : memref<2x1024xf32, #tpu.memory_space<any>>) target(%1 : memref<2x1024xf32, #tpu.memory_space<any>>) target_semaphore(%3 : memref<!tpu.dma_semaphore, #tpu.memory_space<semaphore_mem>>)
    %c0_i32_4 = arith.constant 0 : i32
    %c0_i32_5 = arith.constant 0 : i32
    %c0_i32_6 = arith.constant 0 : i32
    %4 = tpu.memref_slice %arg0[%c0_i32_5, %c0_i32_6] : memref<2x1024xf32, #tpu.memory_space<any>> -> memref<2x1024xf32, #tpu.memory_space<any>>
    %c0_i32_7 = arith.constant 0 : i32
    %c0_i32_8 = arith.constant 0 : i32
    %5 = tpu.memref_slice %arg1[%c0_i32_7, %c0_i32_8] : memref<2x1024xf32, #tpu.memory_space<any>> -> memref<2x1024xf32, #tpu.memory_space<any>>
    %6 = tpu.memref_slice %arg2[%c0_i32_4] : memref<1x!tpu.dma_semaphore, #tpu.memory_space<semaphore_mem>> -> memref<1x!tpu.dma_semaphore, #tpu.memory_space<semaphore_mem>>
    %7 = tpu.memref_squeeze %6 : memref<1x!tpu.dma_semaphore, #tpu.memory_space<semaphore_mem>> -> memref<!tpu.dma_semaphore, #tpu.memory_space<semaphore_mem>>
    tpu.wait_dma2 semaphore(%7 : memref<!tpu.dma_semaphore, #tpu.memory_space<semaphore_mem>>) src(%4 : memref<2x1024xf32, #tpu.memory_space<any>>) dst(%5 : memref<2x1024xf32, #tpu.memory_space<any>>)
    return
  }
}

</mosaic_0001>

<bundles_post_ra>
// kernel: tpu_custom_call.1
= control target key start
LH: loop header
LB: loop body
LE: loop exit
PB: predicated region body
PF: predicated region fallthrough
CT: control target
= control target key end

     0   :  { %s29_s6 = smov [#allocation2]   ;;  %s30_s7 = smov 131072   ;;  %s48_s0 = inlined_call_operand.hbm [shape: f32[2,1024], index: 0, kind: input, shape index: {}]   ;;  %s49_s1 = inlined_call_operand.hbm [shape: f32[2,1024], index: 1, kind: output, shape index: {}]  }
   0x1   :  { %s31_s8 = smov 0  }
   0x2   :  { %12 = dma.general %s48_s0, 256, %s49_s1, %s29_s6, %s30_s7, [#allocation4], %s31_s8, 0  }
   0x3   :  { %27 = dma.done.wait [#allocation2], 256 }
   0x4   :  { %28 = vsyncadd [#allocation2], 4294967040 }
   0x5   :  { %17 = vsyncmov [#allocation2] }
   0x8   :  { %s18_s13 = vpop.sfrf %17 }
   0x9   :  { %p23_p0 = scmp.ne.s32.totalorder %s18_s13, 0 }
   0xb   :  { %22 = shalt.err (%p23_p0)  }

</bundles_post_ra>
